<compile_context>
chip_gen: v7x
topology: tpu7x:2x2x1
jax: 0.10.0
libtpu: 0.0.40
codegen_flags: <defaults>
</compile_context>

<pallas_src>
import jax
import jax.numpy as jnp
from jax import lax
from jax.experimental import pallas as pl
from jax.experimental.pallas import tpu as pltpu

F_IN, F_H1, F_H2, F_OUT = 23, 46, 23, 1
LANE = 128


def mlp_kernel(x_ref, w1_ref, b1_ref, w2_ref, b2_ref, w3_ref, b3_ref, o_ref):
    x = x_ref[...]                                                    # [TB, 23]
    h1 = jnp.dot(x, w1_ref[...], preferred_element_type=jnp.float32) + b1_ref[...]
    h1 = jnp.maximum(h1, 0.0)                                         # [TB, 46]
    h2 = jnp.dot(h1, w2_ref[...], preferred_element_type=jnp.float32) + b2_ref[...]
    h2 = jnp.maximum(h2, 0.0)                                         # [TB, 23]
    # Last layer: contract the feature dims of w3 [1,23] and h2 [TB,23] so the
    # result is a lane-dense [1, TB] row (batch on lanes) -> full-lane stores,
    # no [TB,1] column and no 128x-padded output buffer.
    out = lax.dot_general(w3_ref[...], h2, (((1,), (1,)), ((), ())),
                          preferred_element_type=jnp.float32)         # [1, TB]
    o_ref[...] = (out + b3_ref[...]).astype(o_ref.dtype)


def _choose_tiling(batch, max_tile):
    """Pick a lane-aligned batch tile TB and padded batch B_pad."""
    b_lane = pl.cdiv(batch, LANE) * LANE
    if b_lane < 2 * LANE:
        tb = b_lane                      # single 128-row tile (tiny batches)
    else:
        # >= 2 tiles so both v7x TensorCores get a grid step; each tile is
        # capped at max_tile and sized to keep padding small.
        n_tiles = max(2, pl.cdiv(b_lane, max_tile))
        tb = min(max_tile, pl.cdiv(b_lane, n_tiles * LANE) * LANE)
    b_pad = pl.cdiv(batch, tb) * tb
    return tb, b_pad


def mlp_forward(x, w1, b1, w2, b2, w3, b3, *, max_tile=8192):
    """x: [B, 23] f32.  Weights in PyTorch layout: w [out, in], b [out]."""
    B = x.shape[0]
    TB, B_pad = _choose_tiling(B, max_tile)
    grid = (B_pad // TB,)

    if B_pad != B:
        # Padding only (no transpose); padded rows produce relu(bias) garbage
        # that never touches real outputs and is sliced off below.
        x = jnp.pad(x, ((0, B_pad - B), (0, 0)))

    # Tiny parameter re-layouts (negligible HBM traffic).
    w1t = w1.T                         # [23, 46]: h1 = x @ w1t
    w2t = w2.T                         # [46, 23]: h2 = h1 @ w2t
    b1r = b1.reshape(1, F_H1)
    b2r = b2.reshape(1, F_H2)
    w3r = w3.reshape(F_OUT, F_H2)      # [1, 23], contracted on its feature dim
    b3r = b3.reshape(1, F_OUT)         # [1, 1]

    x_spec = pl.BlockSpec((TB, F_IN), lambda i: (i, 0))
    out_spec = pl.BlockSpec((F_OUT, TB), lambda i: (0, i))

    def const_spec(a):
        # Constant block index -> parameter stays resident, no per-tile re-DMA.
        return pl.BlockSpec(a.shape, lambda i: (0, 0))

    flops = 2 * B_pad * (F_IN * F_H1 + F_H1 * F_H2 + F_H2 * F_OUT)
    bytes_accessed = (B_pad * (F_IN + F_OUT) * 4
                      + 4 * sum(a.size for a in (w1, b1, w2, b2, w3, b3)))

    outT = pl.pallas_call(
        mlp_kernel,
        out_shape=jax.ShapeDtypeStruct((F_OUT, B_pad), jnp.float32),
        grid=grid,
        in_specs=[
            x_spec,
            const_spec(w1t), const_spec(b1r),
            const_spec(w2t), const_spec(b2r),
            const_spec(w3r), const_spec(b3r),
        ],
        out_specs=out_spec,
        compiler_params=pltpu.CompilerParams(
            dimension_semantics=("parallel",),
            vmem_limit_bytes=48 * 1024 * 1024),
        cost_estimate=pl.CostEstimate(
            flops=flops, transcendentals=0, bytes_accessed=bytes_accessed),
    )(x, w1t, b1r, w2t, b2r, w3r, b3r)

    return outT[0, :B].reshape(B, F_OUT)   # [B, 1]


def init_linear(key, fan_in, fan_out):
    # PyTorch nn.Linear default init: U(-1/sqrt(fan_in), 1/sqrt(fan_in)),
    # stored in PyTorch's native layouts: W [out, in], b [out].
    kw, kb = jax.random.split(key)
    bound = 1.0 / jnp.sqrt(jnp.float32(fan_in))
    w = jax.random.uniform(kw, (fan_out, fan_in), jnp.float32, -bound, bound)
    b = jax.random.uniform(kb, (fan_out,), jnp.float32, -bound, bound)
    return w, b


if __name__ == "__main__":
    key = jax.random.PRNGKey(0)
    kx, k1, k2, k3 = jax.random.split(key, 4)

    B = 8
    x = jax.random.normal(kx, (B, F_IN), jnp.float32)

    w1, b1 = init_linear(k1, F_IN, F_H1)
    w2, b2 = init_linear(k2, F_H1, F_H2)
    w3, b3 = init_linear(k3, F_H2, F_OUT)

    out = jax.block_until_ready(mlp_forward(x, w1, b1, w2, b2, w3, b3))

    # Pure-JAX reference (matches the PyTorch module semantics).
    h1 = jnp.maximum(x @ w1.T + b1, 0.0)
    h2 = jnp.maximum(h1 @ w2.T + b2, 0.0)
    ref = h2 @ w3.T + b3

    assert out.shape == (B, F_OUT)
    assert jnp.allclose(out, ref, atol=1e-4, rtol=1e-4)

    print("KERNEL_OK")
</pallas_src>

<mosaic_0001>
module attributes {stable_mosaic.version = 11 : i64} {
  func.func @mlp_kernel(%arg0: i32, %arg1: memref<128x23xf32, #tpu.memory_space<vmem>>, %arg2: memref<23x46xf32, #tpu.memory_space<vmem>>, %arg3: memref<1x46xf32, #tpu.memory_space<vmem>>, %arg4: memref<46x23xf32, #tpu.memory_space<vmem>>, %arg5: memref<1x23xf32, #tpu.memory_space<vmem>>, %arg6: memref<1x23xf32, #tpu.memory_space<vmem>>, %arg7: memref<1x1xf32, #tpu.memory_space<vmem>>, %arg8: memref<1x128xf32, #tpu.memory_space<vmem>>) attributes {dimension_semantics = [#tpu.dimension_semantics<parallel>], iteration_bounds = array<i64: 1>, scalar_prefetch = 0 : i64, scratch_operands = 0 : i64, tpu.core_type = #tpu.core_type<tc>, window_params = [{transform_indices = @transform_0, window_bounds = array<i64: 128, 23>}, {pipeline_mode = #tpu.pipeline_mode<synchronous>, transform_indices = @transform_1, window_bounds = array<i64: 23, 46>}, {pipeline_mode = #tpu.pipeline_mode<synchronous>, transform_indices = @transform_2, window_bounds = array<i64: 1, 46>}, {pipeline_mode = #tpu.pipeline_mode<synchronous>, transform_indices = @transform_3, window_bounds = array<i64: 46, 23>}, {pipeline_mode = #tpu.pipeline_mode<synchronous>, transform_indices = @transform_4, window_bounds = array<i64: 1, 23>}, {pipeline_mode = #tpu.pipeline_mode<synchronous>, transform_indices = @transform_5, window_bounds = array<i64: 1, 23>}, {pipeline_mode = #tpu.pipeline_mode<synchronous>, transform_indices = @transform_6, window_bounds = array<i64: 1, 1>}, {transform_indices = @transform_7, window_bounds = array<i64: 1, 128>}]} {
    %c0 = arith.constant 0 : index
    %c0_0 = arith.constant 0 : index
    %0 = vector.load %arg1[%c0, %c0_0] : memref<128x23xf32, #tpu.memory_space<vmem>>, vector<128x23xf32>
    %c0_1 = arith.constant 0 : index
    %c0_2 = arith.constant 0 : index
    %1 = vector.load %arg2[%c0_1, %c0_2] : memref<23x46xf32, #tpu.memory_space<vmem>>, vector<23x46xf32>
    %cst = arith.constant dense<0.000000e+00> : vector<128x46xf32>
    %2 = tpu.matmul %0, %1, %cst {dimension_numbers = #tpu.dot_dimension_numbers<[1], [0], [0], [1], [0, 0, 1, 1], [], []>} : vector<128x23xf32>, vector<23x46xf32>, vector<128x46xf32> -> vector<128x46xf32>
    %c0_3 = arith.constant 0 : index
    %c0_4 = arith.constant 0 : index
    %3 = vector.load %arg3[%c0_3, %c0_4] : memref<1x46xf32, #tpu.memory_space<vmem>>, vector<1x46xf32>
    %4 = vector.broadcast %3 : vector<1x46xf32> to vector<128x46xf32>
    %5 = arith.addf %2, %4 : vector<128x46xf32>
    %cst_5 = arith.constant 0.000000e+00 : f32
    %6 = vector.broadcast %cst_5 : f32 to vector<128x46xf32>
    %7 = arith.maximumf %5, %6 : vector<128x46xf32>
    %c0_6 = arith.constant 0 : index
    %c0_7 = arith.constant 0 : index
    %8 = vector.load %arg4[%c0_6, %c0_7] : memref<46x23xf32, #tpu.memory_space<vmem>>, vector<46x23xf32>
    %cst_8 = arith.constant dense<0.000000e+00> : vector<128x23xf32>
    %9 = tpu.matmul %7, %8, %cst_8 {dimension_numbers = #tpu.dot_dimension_numbers<[1], [0], [0], [1], [0, 0, 1, 1], [], []>} : vector<128x46xf32>, vector<46x23xf32>, vector<128x23xf32> -> vector<128x23xf32>
    %c0_9 = arith.constant 0 : index
    %c0_10 = arith.constant 0 : index
    %10 = vector.load %arg5[%c0_9, %c0_10] : memref<1x23xf32, #tpu.memory_space<vmem>>, vector<1x23xf32>
    %11 = vector.broadcast %10 : vector<1x23xf32> to vector<128x23xf32>
    %12 = arith.addf %9, %11 : vector<128x23xf32>
    %cst_11 = arith.constant 0.000000e+00 : f32
    %13 = vector.broadcast %cst_11 : f32 to vector<128x23xf32>
    %14 = arith.maximumf %12, %13 : vector<128x23xf32>
    %c0_12 = arith.constant 0 : index
    %c0_13 = arith.constant 0 : index
    %15 = vector.load %arg6[%c0_12, %c0_13] : memref<1x23xf32, #tpu.memory_space<vmem>>, vector<1x23xf32>
    %cst_14 = arith.constant dense<0.000000e+00> : vector<1x128xf32>
    %16 = tpu.matmul %15, %14, %cst_14 {dimension_numbers = #tpu.dot_dimension_numbers<[1], [1], [0], [0], [0, 0, 1, 0], [], []>} : vector<1x23xf32>, vector<128x23xf32>, vector<1x128xf32> -> vector<1x128xf32>
    %c0_15 = arith.constant 0 : index
    %c0_16 = arith.constant 0 : index
    %17 = vector.load %arg7[%c0_15, %c0_16] : memref<1x1xf32, #tpu.memory_space<vmem>>, vector<1x1xf32>
    %18 = vector.broadcast %17 : vector<1x1xf32> to vector<1x128xf32>
    %19 = arith.addf %16, %18 : vector<1x128xf32>
    %c0_17 = arith.constant 0 : index
    %c0_18 = arith.constant 0 : index
    %20 = vector.load %arg8[%c0_17, %c0_18] : memref<1x128xf32, #tpu.memory_space<vmem>>, vector<1x128xf32>
    tpu.vector_store %arg8[%c0_17, %c0_18], %19 {strides = array<i32>} : memref<1x128xf32, #tpu.memory_space<vmem>>, vector<1x128xf32>,
    return
  }
  func.func @transform_0(%arg0: i32) -> (i32, i32) {
    %c0_i32 = arith.constant 0 : i32
    %c0_i32_0 = arith.constant 0 : i32
    return %arg0, %c0_i32 : i32, i32
  }
  func.func @transform_1(%arg0: i32) -> (i32, i32) {
    %c0_i32 = arith.constant 0 : i32
    %c0_i32_0 = arith.constant 0 : i32
    %c0_i32_1 = arith.constant 0 : i32
    return %c0_i32, %c0_i32_0 : i32, i32
  }
  func.func @transform_2(%arg0: i32) -> (i32, i32) {
    %c0_i32 = arith.constant 0 : i32
    %c0_i32_0 = arith.constant 0 : i32
    %c0_i32_1 = arith.constant 0 : i32
    return %c0_i32, %c0_i32_0 : i32, i32
  }
  func.func @transform_3(%arg0: i32) -> (i32, i32) {
    %c0_i32 = arith.constant 0 : i32
    %c0_i32_0 = arith.constant 0 : i32
    %c0_i32_1 = arith.constant 0 : i32
    return %c0_i32, %c0_i32_0 : i32, i32
  }
  func.func @transform_4(%arg0: i32) -> (i32, i32) {
    %c0_i32 = arith.constant 0 : i32
    %c0_i32_0 = arith.constant 0 : i32
    %c0_i32_1 = arith.constant 0 : i32
    return %c0_i32, %c0_i32_0 : i32, i32
  }
  func.func @transform_5(%arg0: i32) -> (i32, i32) {
    %c0_i32 = arith.constant 0 : i32
    %c0_i32_0 = arith.constant 0 : i32
    %c0_i32_1 = arith.constant 0 : i32
    return %c0_i32, %c0_i32_0 : i32, i32
  }
  func.func @transform_6(%arg0: i32) -> (i32, i32) {
    %c0_i32 = arith.constant 0 : i32
    %c0_i32_0 = arith.constant 0 : i32
    %c0_i32_1 = arith.constant 0 : i32
    return %c0_i32, %c0_i32_0 : i32, i32
  }
  func.func @transform_7(%arg0: i32) -> (i32, i32) {
    %c0_i32 = arith.constant 0 : i32
    %c0_i32_0 = arith.constant 0 : i32
    return %c0_i32, %arg0 : i32, i32
  }
}

</mosaic_0001>

<bundles_post_ra>
// kernel: tpu_custom_call.1
= control target key start
LH: loop header
LB: loop body
LE: loop exit
PB: predicated region body
PF: predicated region fallthrough
CT: control target
= control target key end

     0   :  { %s1144_s0 = inlined_call_operand.vmem [shape: f32[128,23], index: 0, kind: input, shape index: {}]   ;;  %s1145_s1 = inlined_call_operand.vmem [shape: f32[23,46], index: 1, kind: input, shape index: {}]   ;;  %s1146_s2 = inlined_call_operand.vmem [shape: f32[1,46], index: 2, kind: input, shape index: {}]   ;;  %s1147_s3 = inlined_call_operand.vmem [shape: f32[46,23], index: 3, kind: input, shape index: {}]   ;;  %s1148_s4 = inlined_call_operand.vmem [shape: f32[1,23], index: 4, kind: input, shape index: {}]   ;;  %s1149_s5 = inlined_call_operand.vmem [shape: f32[1,23], index: 5, kind: input, shape index: {}]   ;;  %s1150_s6 = inlined_call_operand.<no memory space> [shape: f32[1,1], index: 6, kind: input, shape index: {}]   ;;  %s1151_s7 = inlined_call_operand.hbm [shape: f32[1,128], index: 7, kind: output, shape index: {}]  }
   0x1   :  { %v12_v0 = vstv %s1150_s6 }
   0x2   :  { %13 = vst [vmem:[#allocation2] sm:$0x1] %v12_v0 }
   0x3   :  { %v45_v1 = vld [vmem:[%s1145_s1] sm:$0xff]  ;;  %v46_v2 = vld [vmem:[%s1145_s1 + $0x8] sm:$0xff]  ;;  %vm55_vm0 = vcmask 187392   ;;  %v47_v5 = vld [vmem:[%s1145_s1 + $0x10] sm:$0x7f]  ;;  %vm104_vm1 = vcmask 1046528  }
   0x4   :  { %v855_v3 = vpack.c.bf16 %v46_v2, %v45_v1  ;;  %v29_v4 = vld [vmem:[%s1144_s0] sm:$0xff]  ;;  %v30_v6 = vld [vmem:[%s1144_s0 + $0x8] sm:$0xff]  ;;  %v31_v9 = vld [vmem:[%s1144_s0 + $0x10] sm:$0xff]  ;;  %vm331_vm2 = vcmask 1045504  }
   0x5   :  { %760 = vmatprep.mubr.msk.f32.mxu1 %vm55_vm0, %v29_v4  ;;  %v269_v7 = vld [vmem:[%s1147_s3] sm:$0xff]  ;;  %v270_v8 = vld [vmem:[%s1147_s3 + $0x8] sm:$0xff]  ;;  %v271_v11 = vld [vmem:[%s1147_s3 + $0x10] sm:$0xff] }
   0x6   :  { %856 = vmatprep.subr.bf16.mxu1 %v855_v3  ;;  %v859_v10 = vpack.c.bf16 %v270_v8, %v269_v7  ;;  %v272_v12 = vld [vmem:[%s1147_s3 + $0x18] sm:$0xff]  ;;  %v273_v14 = vld [vmem:[%s1147_s3 + $0x20] sm:$0xff]  ;;  %v274_v15 = vld [vmem:[%s1147_s3 + $0x28] sm:$0x3f] }
   0x7   :  { %858 = vmatpush3.bf16.msra.mxu1 %v855_v3  ;;  %v863_v13 = vpack.c.bf16 %v272_v12, %v271_v11 }
   0x8   :  { %758 = vmatprep.subr.msk.mxu1 %vm104_vm1, %v47_v5 }
   0xb   :  { %759 = vmatpush3.msk.msra.mxu1 %vm104_vm1, %v47_v5 }
   0xc   :  { %761 = vmatmul.mubr.msk.f32.vlgmr.msra.gmra.mrb[0].mxu1 %vm55_vm0, %v30_v6  ;;  %860 = vmatprep.subr.bf16.mxu1 %v859_v10 }
   0xd   :  { %14 = vsyncpa [#allocation4], 0  ;;  %763 = vmatprep.mubr.msk.f32.mxu1 %vm55_vm0, %v31_v9  ;;  %v32_v16 = vld [vmem:[%s1144_s0 + $0x18] sm:$0xff]  ;;  %862 = vmatpush3.bf16.msra.mxu1 %v859_v10  ;;  %v33_v17 = vld [vmem:[%s1144_s0 + $0x20] sm:$0xff]  ;;  %v867_v18 = vpack.c.bf16 %v274_v15, %v273_v14  ;;  %vm936_vm3 = vmmov 1   ;;  %vm282_vm5 = vcmask 375808  }
   0xe   :  { %864 = vmatprep.subr.bf16.mxu1 %v863_v13  ;;  %vm868_vm4 = vmpackc.low %vm331_vm2, %vm936_vm3  ;;  %v34_v19 = vld [vmem:[%s1144_s0 + $0x28] sm:$0xff]  ;;  %v35_v20 = vld [vmem:[%s1144_s0 + $0x30] sm:$0xff]  ;;  %v937_v15 = vmov 0.0|0.0   ;;  %vm938_vm6 = vmmov 0   ;;  %s941_s28 = smov [#allocation3]  }
   0xf   :  { %v36_v21 = vld [vmem:[%s1144_s0 + $0x38] sm:$0xff]  ;;  %v37_v22 = vld [vmem:[%s1144_s0 + $0x40] sm:$0xff]  ;;  %v38_v23 = vld [vmem:[%s1144_s0 + $0x48] sm:$0xff]  ;;  %873 = vmatprep.subr.bf16.mxu0 %v937_v15  ;;  %s635_s3 = sshll.u32 %s941_s28, 4  ;;  %s636_s3 = int_to_ptr.vmem [resolvable:$true] %s635_s3 }
  0x10   :  { %764 = vmatmul.mubr.msk.f32.gmra.mrb[2].mxu1 %vm55_vm0, %v32_v16  ;;  %v39_v24 = vld [vmem:[%s1144_s0 + $0x50] sm:$0xff]  ;;  %v40_v25 = vld [vmem:[%s1144_s0 + $0x58] sm:$0xff]  ;;  %v41_v26 = vld [vmem:[%s1144_s0 + $0x60] sm:$0xff]  ;;  %v939_v16 = vmov 0.0   ;;  %s912_s29 = scalar_lea.vmem %s636_s3, 16  ;;  %s916_s30 = scalar_lea.vmem %s636_s3, 32 }
  0x11   :  { %766 = vmatprep.mubr.msk.f32.mxu1 %vm55_vm0, %v33_v17  ;;  %866 = vmatpush3.bf16.msra.mxu1 %v863_v13  ;;  %v42_v27 = vld [vmem:[%s1144_s0 + $0x68] sm:$0xff]  ;;  %v43_v28 = vld [vmem:[%s1144_s0 + $0x70] sm:$0xff]  ;;  %v44_v29 = vld [vmem:[%s1144_s0 + $0x78] sm:$0xff]  ;;  %p913_p0 = scmp.ne.s32.totalorder %s636_s3, %s912_s29  ;;  %p917_p1 = scmp.lt.s32.totalorder %s636_s3, %s636_s3 }
  0x12   :  { %869 = vmatprep.subr.msk.bf16.mxu1 %vm868_vm4, %v867_v18  ;;  %v643_v30 = vld [vmem:[%s1146_s2] ss:$0 sm:$0xff]  ;;  %852 = vmatprep.mubr.msk.f32.mxu0 %vm938_vm6, %v939_v16  ;;  %vm1101_vm7 = vmpackc.low %vm55_vm0, %vm55_vm0  ;;  %p918_p2 = scmp.lt.s32.totalorder %s916_s30, %s912_s29 }
  0x13   :  { %v497_v17 = vld [vmem:[#allocation2] sm:$0x1] }
  0x14   :  { %767 = vmatmul.mubr.msk.f32.gmra.mrb[4].mxu1 %vm55_vm0, %v34_v19  ;;  %v661_v19 = vld [vmem:[%s1148_s4] ss:$0 sm:$0xff]  ;;  %p919_p3 = por %p918_p2, %p917_p1 }
  0x15   :  { %769 = vmatprep.mubr.msk.f32.mxu1 %vm55_vm0, %v35_v20  ;;  %872 = vmatpush3.bf16.msk.msra.mxu1 %vm868_vm4, %v867_v18  ;;  %v940_v18 = vmov 0  }
  0x16   :  { %911 = vset.pattern.permute.xlu0 %v940_v18  ;;  %p920_p4 = pnand %p919_p3, %p913_p0 }
  0x17   :  { %500 = vperm.xlu0 %911, %v497_v17  }
  0x18   :  { %770 = vmatmul.mubr.msk.f32.gmra.mrb[6].mxu1 %vm55_vm0, %v36_v21 }
  0x19   :  { %772 = vmatprep.mubr.msk.f32.mxu1 %vm55_vm0, %v37_v22 }
  0x1c   :  { %773 = vmatmul.mubr.msk.f32.gmra.mrb[8].mxu1 %vm55_vm0, %v38_v23 }
  0x1d   :  { %775 = vmatprep.mubr.msk.f32.mxu1 %vm55_vm0, %v39_v24 }
  0x20   :  { %776 = vmatmul.mubr.msk.f32.gmra.mrb[10].mxu1 %vm55_vm0, %v40_v25 }
  0x21   :  { %778 = vmatprep.mubr.msk.f32.mxu1 %vm55_vm0, %v41_v26 }
  0x24   :  { %779 = vmatmul.mubr.msk.f32.gmra.mrb[12].mxu1 %vm55_vm0, %v42_v27 }
  0x25   :  { %781 = vmatprep.mubr.msk.f32.mxu1 %vm55_vm0, %v43_v28 }
  0x28   :  { %782 = vmatmul.mubr.msk.f32.gmra.mrb[14].mxu1 %vm55_vm0, %v44_v29 }
  0x96   :  { %v501_v18 = vpop.permute.xlu0 %500 }
  0xdf   :  { %v762_v31 = vpop.f32.mrb[0].mxu1 }
  0xe0   :  { %v180_v32 = vadd.f32 %v762_v31, %v643_v30  ;;  %v174_v33 = vpop.f32.mrb[1].mxu1 }
  0xe1   :  { %v175_v34 = vadd.f32 %v643_v30, %v174_v33 }
  0xe2   :  { %v254_v37 = vmax.f32 %v180_v32, 0.0 }
  0xe3   :  { %v253_v35 = vmax.f32 %v175_v34, 0.0  ;;  %v765_v36 = vpop.f32.mrb[2].mxu1 }
  0xe4   :  { %v190_v38 = vadd.f32 %v765_v36, %v643_v30  ;;  %v184_v39 = vpop.f32.mrb[3].mxu1 }
  0xe5   :  { %v185_v40 = vadd.f32 %v643_v30, %v184_v39  ;;  %796 = vmatprep.mubr.msk.f32.mxu1 %vm282_vm5, %v253_v35 }
  0xe6   :  { %v256_v41 = vmax.f32 %v190_v38, 0.0  ;;  %797 = vmatmul.mubr.msk.f32.vlgmr.msra.gmra.mrb[16].mxu1 %vm282_vm5, %v254_v37 }
  0xe7   :  { %v255_v42 = vmax.f32 %v185_v40, 0.0  ;;  %v768_v43 = vpop.f32.mrb[4].mxu1 }
  0xe8   :  { %v200_v44 = vadd.f32 %v768_v43, %v643_v30  ;;  %v194_v45 = vpop.f32.mrb[5].mxu1 }
  0xe9   :  { %799 = vmatprep.mubr.msk.f32.mxu1 %vm282_vm5, %v255_v42  ;;  %v195_v46 = vadd.f32 %v643_v30, %v194_v45 }
  0xea   :  { %800 = vmatmul.mubr.msk.f32.gmra.mrb[18].mxu1 %vm282_vm5, %v256_v41  ;;  %v258_v47 = vmax.f32 %v200_v44, 0.0 }
  0xeb   :  { %v257_v48 = vmax.f32 %v195_v46, 0.0  ;;  %v771_v49 = vpop.f32.mrb[6].mxu1 }
  0xec   :  { %v210_v50 = vadd.f32 %v771_v49, %v643_v30  ;;  %v204_v51 = vpop.f32.mrb[7].mxu1 }
  0xed   :  { %802 = vmatprep.mubr.msk.f32.mxu1 %vm282_vm5, %v257_v48  ;;  %v205_v52 = vadd.f32 %v643_v30, %v204_v51 }
  0xee   :  { %803 = vmatmul.mubr.msk.f32.gmra.mrb[20].mxu1 %vm282_vm5, %v258_v47  ;;  %v260_v53 = vmax.f32 %v210_v50, 0.0 }
  0xef   :  { %v259_v54 = vmax.f32 %v205_v52, 0.0  ;;  %v774_v55 = vpop.f32.mrb[8].mxu1 }
  0xf0   :  { %v220_v56 = vadd.f32 %v774_v55, %v643_v30  ;;  %v214_v57 = vpop.f32.mrb[9].mxu1 }
  0xf1   :  { %805 = vmatprep.mubr.msk.f32.mxu1 %vm282_vm5, %v259_v54  ;;  %v215_v58 = vadd.f32 %v643_v30, %v214_v57 }
  0xf2   :  { %806 = vmatmul.mubr.msk.f32.gmra.mrb[22].mxu1 %vm282_vm5, %v260_v53  ;;  %v262_v59 = vmax.f32 %v220_v56, 0.0 }
  0xf3   :  { %v261_v60 = vmax.f32 %v215_v58, 0.0  ;;  %v777_v61 = vpop.f32.mrb[10].mxu1 }
  0xf4   :  { %v230_v62 = vadd.f32 %v777_v61, %v643_v30  ;;  %v224_v63 = vpop.f32.mrb[11].mxu1 }
  0xf5   :  { %808 = vmatprep.mubr.msk.f32.mxu1 %vm282_vm5, %v261_v60  ;;  %v225_v0 = vadd.f32 %v643_v30, %v224_v63 }
  0xf6   :  { %809 = vmatmul.mubr.msk.f32.gmra.mrb[24].mxu1 %vm282_vm5, %v262_v59  ;;  %v264_v1 = vmax.f32 %v230_v62, 0.0 }
  0xf7   :  { %v263_v2 = vmax.f32 %v225_v0, 0.0  ;;  %v780_v3 = vpop.f32.mrb[12].mxu1 }
  0xf8   :  { %v240_v4 = vadd.f32 %v780_v3, %v643_v30  ;;  %v234_v5 = vpop.f32.mrb[13].mxu1 }
  0xf9   :  { %811 = vmatprep.mubr.msk.f32.mxu1 %vm282_vm5, %v263_v2  ;;  %v235_v6 = vadd.f32 %v643_v30, %v234_v5 }
  0xfa   :  { %812 = vmatmul.mubr.msk.f32.gmra.mrb[26].mxu1 %vm282_vm5, %v264_v1  ;;  %v266_v7 = vmax.f32 %v240_v4, 0.0 }
  0xfb   :  { %v265_v8 = vmax.f32 %v235_v6, 0.0  ;;  %v783_v9 = vpop.f32.mrb[14].mxu1 }
  0xfc   :  { %v250_v10 = vadd.f32 %v783_v9, %v643_v30  ;;  %v244_v11 = vpop.f32.mrb[15].mxu1 }
  0xfd   :  { %814 = vmatprep.mubr.msk.f32.mxu1 %vm282_vm5, %v265_v8  ;;  %v245_v12 = vadd.f32 %v643_v30, %v244_v11 }
  0xfe   :  { %815 = vmatmul.mubr.msk.f32.gmra.mrb[28].mxu1 %vm282_vm5, %v266_v7  ;;  %v268_v13 = vmax.f32 %v250_v10, 0.0 }
  0xff   :  { %v267_v14 = vmax.f32 %v245_v12, 0.0 }
 0x101   :  { %817 = vmatprep.mubr.msk.f32.mxu1 %vm282_vm5, %v267_v14  ;;  %v503_v14 = vlaneseq }
 0x102   :  { %818 = vmatmul.mubr.msk.f32.gmra.mrb[30].mxu1 %vm282_vm5, %v268_v13  ;;  %v496_v13 = vld [vmem:[%s1149_s5] sm:$0x1] }
 0x103   :  { %v504_v16 = vshrl.u32 %v503_v14, 7 }
 0x105   :  { %v505_v17 = vsub.s32 0, %v504_v16 }
 0x1b9   :  { %v798_v20 = vpop.f32.mrb[16].mxu1 }
 0x1ba   :  { %v407_v21 = vadd.f32 %v798_v20, %v661_v19  ;;  %v401_v22 = vpop.f32.mrb[17].mxu1 }
 0x1bb   :  { %v402_v23 = vadd.f32 %v661_v19, %v401_v22 }
 0x1bc   :  { %v481_v24 = vmax.f32 %v407_v21, 0.0 }
 0x1bd   :  { %v480_v25 = vmax.f32 %v402_v23, 0.0  ;;  %v801_v26 = vpop.f32.mrb[18].mxu1 }
 0x1be   :  { %v417_v27 = vadd.f32 %v801_v26, %v661_v19  ;;  %v411_v28 = vpop.f32.mrb[19].mxu1 }
 0x1bf   :  { %v874_v30 = vpack.c.bf16 %v481_v24, %v480_v25  ;;  %v412_v31 = vadd.f32 %v661_v19, %v411_v28 }
 0x1c0   :  { %v483_v32 = vmax.f32 %v417_v27, 0.0 }
 0x1c1   :  { %v482_v33 = vmax.f32 %v412_v31, 0.0  ;;  %876 = vmatpush3.bf16.xpose.msk.msra.mxu0 %vm1101_vm7, %v874_v30  ;;  %v804_v34 = vpop.f32.mrb[20].mxu1 }
 0x1c2   :  { %v427_v35 = vadd.f32 %v804_v34, %v661_v19  ;;  %v421_v36 = vpop.f32.mrb[21].mxu1  ;;  %877 = vmatprep.subr.bf16.mxu0 %v937_v15 }
 0x1c3   :  { %v878_v37 = vpack.c.bf16 %v483_v32, %v482_v33  ;;  %v422_v38 = vadd.f32 %v661_v19, %v421_v36 }
 0x1c4   :  { %v485_v39 = vmax.f32 %v427_v35, 0.0 }
 0x1c5   :  { %v484_v40 = vmax.f32 %v422_v38, 0.0  ;;  %v807_v41 = vpop.f32.mrb[22].mxu1 }
 0x1c6   :  { %v437_v42 = vadd.f32 %v807_v41, %v661_v19  ;;  %v431_v43 = vpop.f32.mrb[23].mxu1 }
 0x1c7   :  { %v882_v44 = vpack.c.bf16 %v485_v39, %v484_v40  ;;  %v432_v45 = vadd.f32 %v661_v19, %v431_v43 }
 0x1c8   :  { %v487_v46 = vmax.f32 %v437_v42, 0.0 }
 0x1c9   :  { %880 = vmatpush3.bf16.xpose.msk.msra.mxu0 %vm1101_vm7, %v878_v37  ;;  %v486_v47 = vmax.f32 %v432_v45, 0.0  ;;  %v810_v48 = vpop.f32.mrb[24].mxu1 }
 0x1ca   :  { %881 = vmatprep.subr.bf16.mxu0 %v937_v15  ;;  %v447_v49 = vadd.f32 %v810_v48, %v661_v19  ;;  %v441_v50 = vpop.f32.mrb[25].mxu1 }
 0x1cb   :  { %v886_v51 = vpack.c.bf16 %v487_v46, %v486_v47  ;;  %v442_v52 = vadd.f32 %v661_v19, %v441_v50 }
 0x1cc   :  { %v489_v53 = vmax.f32 %v447_v49, 0.0 }
 0x1cd   :  { %v488_v54 = vmax.f32 %v442_v52, 0.0  ;;  %v813_v55 = vpop.f32.mrb[26].mxu1 }
 0x1ce   :  { %v457_v56 = vadd.f32 %v813_v55, %v661_v19  ;;  %v451_v57 = vpop.f32.mrb[27].mxu1 }
 0x1cf   :  { %v890_v58 = vpack.c.bf16 %v489_v53, %v488_v54  ;;  %v452_v59 = vadd.f32 %v661_v19, %v451_v57 }
 0x1d0   :  { %v491_v60 = vmax.f32 %v457_v56, 0.0 }
 0x1d1   :  { %884 = vmatpush3.bf16.xpose.msk.msra.mxu0 %vm1101_vm7, %v882_v44  ;;  %v490_v61 = vmax.f32 %v452_v59, 0.0  ;;  %v816_v62 = vpop.f32.mrb[28].mxu1 }
 0x1d2   :  { %885 = vmatprep.subr.bf16.mxu0 %v937_v15  ;;  %v467_v63 = vadd.f32 %v816_v62, %v661_v19  ;;  %v461_v0 = vpop.f32.mrb[29].mxu1 }
 0x1d3   :  { %v894_v1 = vpack.c.bf16 %v491_v60, %v490_v61  ;;  %v462_v2 = vadd.f32 %v661_v19, %v461_v0 }
 0x1d4   :  { %v493_v3 = vmax.f32 %v467_v63, 0.0 }
 0x1d5   :  { %v492_v4 = vmax.f32 %v462_v2, 0.0  ;;  %v819_v5 = vpop.f32.mrb[30].mxu1 }
 0x1d6   :  { %v477_v6 = vadd.f32 %v819_v5, %v661_v19  ;;  %v471_v7 = vpop.f32.mrb[31].mxu1 }
 0x1d7   :  { %v898_v8 = vpack.c.bf16 %v493_v3, %v492_v4  ;;  %v472_v9 = vadd.f32 %v661_v19, %v471_v7  ;;  %v506_v19 = vrot.slane %v501_v18, %v505_v17 }
 0x1d8   :  { %v495_v10 = vmax.f32 %v477_v6, 0.0 }
 0x1d9   :  { %888 = vmatpush3.bf16.xpose.msk.msra.mxu0 %vm1101_vm7, %v886_v51  ;;  %v494_v11 = vmax.f32 %v472_v9, 0.0 }
 0x1da   :  { %889 = vmatprep.subr.bf16.mxu0 %v937_v15 }
 0x1db   :  { %v902_v12 = vpack.c.bf16 %v495_v10, %v494_v11 }
 0x1e1   :  { %892 = vmatpush3.bf16.xpose.msk.msra.mxu0 %vm1101_vm7, %v890_v58 }
 0x1e2   :  { %893 = vmatprep.subr.bf16.mxu0 %v937_v15 }
 0x1e9   :  { %896 = vmatpush3.bf16.xpose.msk.msra.mxu0 %vm1101_vm7, %v894_v1 }
 0x1ea   :  { %897 = vmatprep.subr.bf16.mxu0 %v937_v15 }
 0x1f1   :  { %900 = vmatpush3.bf16.xpose.msk.msra.mxu0 %vm1101_vm7, %v898_v8 }
 0x1f2   :  { %901 = vmatprep.subr.bf16.mxu0 %v937_v15 }
 0x1f9   :  { %904 = vmatpush3.bf16.xpose.msk.msra.mxu0 %vm1101_vm7, %v902_v12 }
 0x200   :  { %853 = vmatmul.mubr.msk.f32.vlgmr.msra.gmra.mrb[0].mxu0 %vm55_vm0, %v496_v13 }
 0x2d3   :  { %v624_v20 = vpop.f32.mrb[0].mxu0 }
 0x2d4   :  { %v625_v21 = vadd.f32 %v624_v20, %v506_v19  ;;  %v854_v22 = vpop.f32.mrb[1].mxu0 }
 0x2d6   :  { %628 = vst [vmem:[#allocation3] sm:$0x1] %v625_v21 }
 0x2d7   :  { %923 = shalt.err (!%p920_p4)
}
 0x2d8   :  { %s924_s9 = scalar_lea.hbm %s1151_s7, 16 }
 0x2d9   :  { %p925_p5 = scmp.ne.s32.totalorder %s1151_s7, %s924_s9  ;;  %p928_p6 = scmp.lt.u32.totalorder %s924_s9, %s1151_s7 }
 0x2db   :  { %p930_p7 = pnand %p928_p6, %p925_p5 }
 0x2dd   :  { %933 = shalt.err (!%p930_p7)
}
 0x2de   :  { %638 = dma.vmem_to_hbm [thread:$0]  %s636_s3, 16, %s1151_s7, [#allocation4]  }
 0x2df   :  { %934 = dma.done.wait [#allocation4], 16  }
 0x2e0   :  { %935 = vsyncadd [#allocation4], 4294967280 }
 0x2e1   :  { %642 = vsyncpa [#allocation4], 1 }

</bundles_post_ra>
